<compile_context>
chip_gen: v5e
topology: v5e:2x2
jax: 0.10.0
libtpu: 0.0.40
codegen_flags: <defaults>
</compile_context>

<pallas_src>
import jax
import jax.numpy as jnp
from jax.experimental import pallas as pl
from jax.experimental.pallas import tpu as pltpu


def _copy_kernel(x_ref, o_ref):
    # Trivial pass-through of one (TR, TC) tile. Test-only plumbing.
    o_ref[...] = x_ref[...]


def _pick_tiles(R, C, itemsize, max_tile_bytes=3 * 1024 * 1024):
    """Pick a VMEM-safe (TR, TC) tile for a 2-D copy.

    Constraints honored:
      * TR is a multiple of 8 or equals R; TC is a multiple of 128 or equals C.
      * TR * TC * itemsize <= max_tile_bytes (3 MiB -> ~12 MiB resident with
        default 2-deep buffering of input + output; fits v5e's 16 MiB scoped
        VMEM with headroom, and trivially fits v6e/v7x).
    """
    # Column tile: prefer the full (lane-dense) width; only tile columns in
    # multiples of 128 when even an 8-row tile at full width blows the budget.
    if C * 8 * itemsize <= max_tile_bytes or C <= 128:
        TC = C
    else:
        TC = (max_tile_bytes // (8 * itemsize)) // 128 * 128
        TC = max(128, min(TC, (C // 128) * 128))

    # Row tile: full R if it fits, else the largest multiple of 8 that fits.
    if R * TC * itemsize <= max_tile_bytes or R <= 8:
        TR = R
    else:
        TR = (max_tile_bytes // (TC * itemsize)) // 8 * 8
        TR = max(8, min(TR, R))
    return TR, TC


def _identity_pallas(x2d: jnp.ndarray) -> jnp.ndarray:
    """Test-only identity over a lane-dense 2-D slab (not used by forward)."""
    R, C = x2d.shape
    itemsize = jnp.dtype(x2d.dtype).itemsize
    TR, TC = _pick_tiles(R, C, itemsize)

    grid = (pl.cdiv(R, TR), pl.cdiv(C, TC))
    return pl.pallas_call(
        _copy_kernel,
        out_shape=jax.ShapeDtypeStruct((R, C), x2d.dtype),
        grid_spec=pl.GridSpec(
            grid=grid,
            in_specs=[pl.BlockSpec((TR, TC), lambda i, j: (i, j))],
            out_specs=pl.BlockSpec((TR, TC), lambda i, j: (i, j)),
        ),
        compiler_params=pltpu.CompilerParams(
            # Both axes are independent: shards grid steps across v7x's 2 TCs.
            dimension_semantics=("parallel", "parallel"),
        ),
    )(x2d)


class DummyController:
    """Dummy controller that returns None (matches PyTorch semantics exactly)."""

    def __init__(self):
        self.num_controls = 0
        self.num_control_params = 0
        # No parameters: the PyTorch __init__ defines none.

    def forward(self, x: jnp.ndarray):
        # No compute, no kernel launch, no HBM traffic — exactly like PyTorch.
        # TODO(synk): forward() has no computable body (returns None); the
        # Pallas identity kernel above is a test-only plumbing check and is
        # never invoked from the module path.
        return None

    def __call__(self, x: jnp.ndarray):
        return self.forward(x)


if __name__ == "__main__":
    key = jax.random.PRNGKey(0)
    # Small (batch, channels, time) control signal.
    B, C, T = 2, 4, 128
    x = jax.random.normal(key, (B, C, T), dtype=jnp.float32)

    # Test-only plumbing check of the Pallas kernel (not part of the module).
    # Lane-dense flatten: (B, C*T) maximizes the last (lane) dimension.
    x2d = x.reshape(B, C * T)
    y2d = _identity_pallas(x2d)
    jax.block_until_ready(y2d)
    assert bool(jnp.allclose(y2d, x2d)), "identity kernel mismatch"

    # The actual module forward: returns None, exactly like the PyTorch module,
    # and performs no kernel launch / data movement.
    controller = DummyController()
    out = controller(x)
    assert out is None, "DummyController.forward must return None"
    assert controller.num_controls == 0
    assert controller.num_control_params == 0

    print("KERNEL_OK")
</pallas_src>

<mosaic_0001>
module attributes {stable_mosaic.version = 11 : i64} {
  func.func @_copy_kernel(%arg0: i32, %arg1: i32, %arg2: memref<2x512xf32, #tpu.memory_space<vmem>>, %arg3: memref<2x512xf32, #tpu.memory_space<vmem>>) attributes {dimension_semantics = [#tpu.dimension_semantics<parallel>, #tpu.dimension_semantics<parallel>], iteration_bounds = array<i64: 1, 1>, scalar_prefetch = 0 : i64, scratch_operands = 0 : i64, tpu.core_type = #tpu.core_type<tc>, window_params = [{transform_indices = @transform_0, window_bounds = array<i64: 2, 512>}, {transform_indices = @transform_1, window_bounds = array<i64: 2, 512>}]} {
    %c0 = arith.constant 0 : index
    %c0_0 = arith.constant 0 : index
    %0 = vector.load %arg2[%c0, %c0_0] : memref<2x512xf32, #tpu.memory_space<vmem>>, vector<2x512xf32>
    %c0_1 = arith.constant 0 : index
    %c0_2 = arith.constant 0 : index
    %1 = vector.load %arg3[%c0_1, %c0_2] : memref<2x512xf32, #tpu.memory_space<vmem>>, vector<2x512xf32>
    tpu.vector_store %arg3[%c0_1, %c0_2], %0 {strides = array<i32>} : memref<2x512xf32, #tpu.memory_space<vmem>>, vector<2x512xf32>,
    return
  }
  func.func @transform_0(%arg0: i32, %arg1: i32) -> (i32, i32) {
    %c0_i32 = arith.constant 0 : i32
    return %arg0, %arg1 : i32, i32
  }
  func.func @transform_1(%arg0: i32, %arg1: i32) -> (i32, i32) {
    %c0_i32 = arith.constant 0 : i32
    return %arg0, %arg1 : i32, i32
  }
}

</mosaic_0001>

<bundles_post_ra>
// kernel: tpu_custom_call.1
= control target key start
LH: loop header
LB: loop body
LE: loop exit
PB: predicated region body
PF: predicated region fallthrough
CT: control target
= control target key end

     0   :  { %6 = vsyncpa [#allocation3], 0  ;;  %s114_s0 = inlined_call_operand.hbm [shape: f32[2,512], index: 0, kind: input, shape index: {}]   ;;  %s115_s1 = inlined_call_operand.hbm [shape: f32[2,512], index: 1, kind: output, shape index: {}]  }
   0x1   :  { %7 = vsyncpa [#allocation4], 0  ;;  %s13_s8 = sshll.u32 %s114_s0, 4  ;;  %s96_s9 = smov [#allocation2]   ;;  %s14_s8 = int_to_ptr.hbm [resolvable:$true] %s13_s8 }
   0x2   :  { %s15_s10 = sshll.u32 %s96_s9, 4  ;;  %s16_s10 = int_to_ptr.vmem [resolvable:$true] %s15_s10 }
   0x3   :  { %18 = dma.hbm_to_vmem [thread:$0]  %s14_s8, 128, %s16_s10, [#allocation3]  }
   0x4   :  { %92 = dma.done.wait [#allocation3], 128  }
   0x5   :  { %93 = vsyncadd [#allocation3], 4294967168  ;;  %s97_s11 = smov [#allocation5]   ;;  %s32_s15 = sshll.u32 %s115_s1, 4  ;;  %v23_v0 = vld [vmem:[#allocation2] sm:$0xff]  ;;  %s33_s15 = int_to_ptr.hbm [resolvable:$true] %s32_s15 }
   0x6   :  { %s30_s12 = sshll.u32 %s97_s11, 4  ;;  %24 = vst [vmem:[#allocation5] sm:$0xff] %v23_v0  ;;  %s31_s12 = int_to_ptr.vmem [resolvable:$true] %s30_s12 }
   0x7   :  { %35 = dma.vmem_to_hbm [thread:$0]  %s31_s12, 128, %s33_s15, [#allocation4]  }
   0x8   :  { %94 = dma.done.wait [#allocation4], 128  }
   0x9   :  { %95 = vsyncadd [#allocation4], 4294967168 }
   0xa   :  { %40 = vsyncpa [#allocation3], 1 }
   0xb   :  { %41 = vsyncpa [#allocation4], 1 }

</bundles_post_ra>
